<compile_context>
chip_gen: v7x
topology: tpu7x:2x2x1
jax: 0.10.0
libtpu: 0.0.40
codegen_flags: <defaults>
</compile_context>

<pallas_src>
import jax
import jax.numpy as jnp
from jax.experimental import pallas as pl
from jax.experimental.pallas import tpu as pltpu

LANE = 128  # vreg lane width


def _round_up(n, m):
    return (n + m - 1) // m * m


def _cdiv(a, b):
    return -(-a // b)


# ---------------------------------------------------------------------------
# Kernels
# ---------------------------------------------------------------------------

def _mlp_kernel_resident(x_ref, w1_ref, b1_ref, w2_ref, b2_ref, o_ref):
    """Both layers' weights VMEM-resident; single grid axis streams batch tiles."""
    # Cast raw f32 activations to the MXU dtype on the VPU (under the DMA).
    x = x_ref[...].astype(w1_ref.dtype)
    h = jnp.dot(x, w1_ref[...], preferred_element_type=jnp.float32)     # fc1 (MXU)
    h = jnp.maximum(h + b1_ref[...], 0.0)                               # bias+ReLU (VPU, f32)
    y = jnp.dot(h.astype(w2_ref.dtype), w2_ref[...],
                preferred_element_type=jnp.float32)                     # fc2 (MXU)
    o_ref[...] = (y + b2_ref[...]).astype(o_ref.dtype)                  # masked O-wide store


def _mlp_kernel_ktiled(x_ref, w1_ref, b1_ref, w2_ref, b2_ref, o_ref, h_acc):
    """fc1 contraction tiled over the input-feature axis (grid axis 1, 'arbitrary')."""
    k = pl.program_id(1)

    @pl.when(k == 0)
    def _():
        h_acc[...] = jnp.zeros_like(h_acc)

    x = x_ref[...].astype(w1_ref.dtype)
    h_acc[...] += jnp.dot(x, w1_ref[...], preferred_element_type=jnp.float32)

    @pl.when(k == pl.num_programs(1) - 1)
    def _():
        h = jnp.maximum(h_acc[...] + b1_ref[...], 0.0)
        y = jnp.dot(h.astype(w2_ref.dtype), w2_ref[...],
                    preferred_element_type=jnp.float32)
        o_ref[...] = (y + b2_ref[...]).astype(o_ref.dtype)


# ---------------------------------------------------------------------------
# Wrapper
# ---------------------------------------------------------------------------

def sentiment_classifier_forward(
        x, w1, b1, w2, b2, *,
        tile_b=512,
        tile_k=512,
        matmul_dtype=jnp.bfloat16,
        max_resident_fc1_bytes=24 << 20,   # ~1/3 of v7x's 64 MiB per-TC VMEM
        single_buffer_weights=False,       # v7x: pl.Buffered(1) on resident weights
        vmem_limit_bytes=None):
    """x: (B, input). w1: (input, hidden). b1: (hidden,) or (1, hidden). w2/b2 likewise."""
    B, I = x.shape
    H = w1.shape[1]
    O = w2.shape[1]
    out_dtype = x.dtype
    mm_itemsize = jnp.dtype(matmul_dtype).itemsize

    # Weights/biases are O(I*H), read once per launch -> cheap to cast here.
    w1c = w1.astype(matmul_dtype)
    w2c = w2.astype(matmul_dtype)
    b1c = b1.reshape(1, H).astype(jnp.float32)
    b2c = b2.reshape(1, O).astype(jnp.float32)

    # Batch tile: multiple of 16 rows for bf16 sublane packing (32 for 8-bit).
    row_align = 8 * max(1, 4 // mm_itemsize)
    eff_tile_b = min(tile_b, _round_up(B, row_align))
    if eff_tile_b >= B and B > 2 * row_align:
        # Keep >= 2 batch tiles so v7x's two TensorCores both get work.
        eff_tile_b = _round_up(_cdiv(B, 2), row_align)
    if eff_tile_b > B:
        # Tiny batch: pad rows up to one aligned tile (exact; sliced off below).
        x = jnp.pad(x, ((0, eff_tile_b - B), (0, 0)))
    Bx = x.shape[0]
    grid_b = _cdiv(Bx, eff_tile_b)

    wmode = pl.Buffered(1) if single_buffer_weights else None
    n_wbuf = 1 if single_buffer_weights else 2

    def _spec(shape, index_map, mode=None):
        if mode is None:
            return pl.BlockSpec(shape, index_map)
        return pl.BlockSpec(shape, index_map, pipeline_mode=mode)

    fc1_bytes = I * H * mm_itemsize
    use_resident = fc1_bytes <= max_resident_fc1_bytes

    if use_resident:
        kernel = _mlp_kernel_resident
        grid = (grid_b,)
        in_specs = [
            pl.BlockSpec((eff_tile_b, I), lambda i: (i, 0)),   # x streams (raw f32)
            _spec((I, H), lambda i: (0, 0), wmode),            # w1 resident
            _spec((1, H), lambda i: (0, 0), wmode),            # b1 resident
            _spec((H, O), lambda i: (0, 0), wmode),            # w2 resident
            _spec((1, O), lambda i: (0, 0), wmode),            # b2 resident
        ]
        out_spec = pl.BlockSpec((eff_tile_b, O), lambda i: (i, 0))
        scratch_shapes = []
        dim_sem = ("parallel",)
        resident_bytes = n_wbuf * (fc1_bytes + H * O * mm_itemsize) + 4 * (H + O)
        streamed_bytes = eff_tile_b * (I * x.dtype.itemsize
                                       + O * jnp.dtype(out_dtype).itemsize)
        scratch_bytes = eff_tile_b * H * 4              # f32 fc1 intermediate
    else:
        # K-tiled fallback: fc1 weights too big to sit resident (e.g. v7x 64 MiB/TC).
        tile_k_eff = min(_round_up(tile_k, LANE), _round_up(I, LANE))
        Ikp = _round_up(I, tile_k_eff)
        if Ikp != I:
            # Exact zero-padding of the contraction dim (zero rows/cols contribute 0).
            x = jnp.pad(x, ((0, 0), (0, Ikp - I)))
            w1c = jnp.pad(w1c, ((0, Ikp - I), (0, 0)))
        grid_k = Ikp // tile_k_eff
        kernel = _mlp_kernel_ktiled
        grid = (grid_b, grid_k)
        in_specs = [
            pl.BlockSpec((eff_tile_b, tile_k_eff), lambda i, k: (i, k)),  # x streams
            pl.BlockSpec((tile_k_eff, H), lambda i, k: (k, 0)),           # w1 streams over k
            _spec((1, H), lambda i, k: (0, 0), wmode),
            _spec((H, O), lambda i, k: (0, 0), wmode),
            _spec((1, O), lambda i, k: (0, 0), wmode),
        ]
        out_spec = pl.BlockSpec((eff_tile_b, O), lambda i, k: (i, 0))
        scratch_shapes = [pltpu.VMEM((eff_tile_b, H), jnp.float32)]       # fc1 accumulator
        dim_sem = ("parallel", "arbitrary")    # reduction axis last, arbitrary
        resident_bytes = n_wbuf * (H * O * mm_itemsize) + 4 * (H + O)
        streamed_bytes = (eff_tile_b * tile_k_eff * x.dtype.itemsize
                          + tile_k_eff * H * mm_itemsize
                          + eff_tile_b * O * jnp.dtype(out_dtype).itemsize)
        scratch_bytes = eff_tile_b * H * 4 * 2 + eff_tile_b * O * 4

    if vmem_limit_bytes is None:
        # Explicit VMEM budget (instead of shrinking tiles on v5e/v6e): resident
        # weights + double-buffered streamed tiles + scratch + headroom.
        need = resident_bytes + 2 * streamed_bytes + scratch_bytes
        need = int(need * 1.5) + (2 << 20)
        vmem_limit_bytes = int(min(max(need, 16 << 20), 64 << 20))

    out = pl.pallas_call(
        kernel,
        out_shape=jax.ShapeDtypeStruct((Bx, O), out_dtype),
        grid_spec=pltpu.PrefetchScalarGridSpec(
            num_scalar_prefetch=0,
            grid=grid,
            in_specs=in_specs,
            out_specs=out_spec,
            scratch_shapes=scratch_shapes,
        ),
        compiler_params=pltpu.CompilerParams(
            dimension_semantics=dim_sem,
            vmem_limit_bytes=vmem_limit_bytes,
        ),
    )(x, w1c, b1c, w2c, b2c)

    # Keep the batch slice: ragged/padded tail rows are discarded here.
    return out[:B]


# ---------------------------------------------------------------------------
# Reference & init
# ---------------------------------------------------------------------------

def init_params(key, input_size, hidden_size, output_size, dtype=jnp.float32):
    """Deterministic init mimicking nn.Linear's uniform(-1/sqrt(fan_in), +)."""
    k1, k2, k3, k4 = jax.random.split(key, 4)
    lim1 = 1.0 / (input_size ** 0.5)
    lim2 = 1.0 / (hidden_size ** 0.5)
    # Stored as (in, out) — transpose of PyTorch's (out, in).
    w1 = jax.random.uniform(k1, (input_size, hidden_size), dtype, -lim1, lim1)
    b1 = jax.random.uniform(k2, (1, hidden_size), dtype, -lim1, lim1)
    w2 = jax.random.uniform(k3, (hidden_size, output_size), dtype, -lim2, lim2)
    b2 = jax.random.uniform(k4, (1, output_size), dtype, -lim2, lim2)
    return w1, b1, w2, b2


def reference_forward(x, w1, b1, w2, b2, matmul_dtype=jnp.bfloat16):
    """Plain-JAX reference with the same bf16-matmul / f32-epilogue recipe."""
    h = jnp.dot(x.astype(matmul_dtype), w1.astype(matmul_dtype),
                preferred_element_type=jnp.float32)
    h = jnp.maximum(h + b1.reshape(1, -1), 0.0)
    y = jnp.dot(h.astype(matmul_dtype), w2.astype(matmul_dtype),
                preferred_element_type=jnp.float32)
    return y + b2.reshape(1, -1)


if __name__ == "__main__":
    key = jax.random.PRNGKey(0)
    kx1, kp1, kx2, kp2 = jax.random.split(key, 4)

    # --- Path 1: resident-weight kernel (toy SentimentClassifier sizes) -------
    # Batch large enough for >1 (ragged) batch tile.
    batch, input_size, hidden_size, output_size = 500, 32, 64, 16
    x = jax.random.normal(kx1, (batch, input_size), jnp.float32)
    w1, b1, w2, b2 = init_params(kp1, input_size, hidden_size, output_size)

    out = sentiment_classifier_forward(x, w1, b1, w2, b2)
    out = jax.block_until_ready(out)
    ref = reference_forward(x, w1, b1, w2, b2)
    assert out.shape == (batch, output_size), out.shape
    assert jnp.allclose(out, ref, atol=2e-3, rtol=2e-3), \
        float(jnp.max(jnp.abs(out - ref)))

    # --- Path 2: K-tiled fallback (forced here; auto-selected when fc1 weights
    # exceed the per-TC resident budget, e.g. large bag-of-words inputs on v7x) -
    batch2, in2, hid2, out2 = 300, 384, 96, 16
    x2 = jax.random.normal(kx2, (batch2, in2), jnp.float32)
    params2 = init_params(kp2, in2, hid2, out2)
    out_k = sentiment_classifier_forward(
        x2, *params2, tile_b=256, tile_k=128, max_resident_fc1_bytes=0)
    out_k = jax.block_until_ready(out_k)
    ref_k = reference_forward(x2, *params2)
    assert out_k.shape == (batch2, out2), out_k.shape
    assert jnp.allclose(out_k, ref_k, atol=2e-3, rtol=2e-3), \
        float(jnp.max(jnp.abs(out_k - ref_k)))

    print("KERNEL_OK")
</pallas_src>

<mosaic_0001>
module attributes {stable_mosaic.version = 11 : i64} {
  func.func @_mlp_kernel_resident(%arg0: i32, %arg1: memref<256x32xf32, #tpu.memory_space<vmem>>, %arg2: memref<32x64xbf16, #tpu.memory_space<vmem>>, %arg3: memref<1x64xf32, #tpu.memory_space<vmem>>, %arg4: memref<64x16xbf16, #tpu.memory_space<vmem>>, %arg5: memref<1x16xf32, #tpu.memory_space<vmem>>, %arg6: memref<256x16xf32, #tpu.memory_space<vmem>>) attributes {dimension_semantics = [#tpu.dimension_semantics<parallel>], iteration_bounds = array<i64: 2>, scalar_prefetch = 0 : i64, scratch_operands = 0 : i64, tpu.core_type = #tpu.core_type<tc>, window_params = [{transform_indices = @transform_0, window_bounds = array<i64: 256, 32>}, {pipeline_mode = #tpu.pipeline_mode<synchronous>, transform_indices = @transform_1, window_bounds = array<i64: 32, 64>}, {pipeline_mode = #tpu.pipeline_mode<synchronous>, transform_indices = @transform_2, window_bounds = array<i64: 1, 64>}, {pipeline_mode = #tpu.pipeline_mode<synchronous>, transform_indices = @transform_3, window_bounds = array<i64: 64, 16>}, {pipeline_mode = #tpu.pipeline_mode<synchronous>, transform_indices = @transform_4, window_bounds = array<i64: 1, 16>}, {transform_indices = @transform_5, window_bounds = array<i64: 256, 16>}]} {
    %c0 = arith.constant 0 : index
    %c0_0 = arith.constant 0 : index
    %0 = vector.load %arg1[%c0, %c0_0] : memref<256x32xf32, #tpu.memory_space<vmem>>, vector<256x32xf32>
    %1 = arith.truncf %0 : vector<256x32xf32> to vector<256x32xbf16>
    %c0_1 = arith.constant 0 : index
    %c0_2 = arith.constant 0 : index
    %2 = vector.load %arg2[%c0_1, %c0_2] : memref<32x64xbf16, #tpu.memory_space<vmem>>, vector<32x64xbf16>
    %cst = arith.constant dense<0.000000e+00> : vector<256x64xf32>
    %3 = tpu.matmul %1, %2, %cst {dimension_numbers = #tpu.dot_dimension_numbers<[1], [0], [0], [1], [0, 0, 1, 1], [], []>} : vector<256x32xbf16>, vector<32x64xbf16>, vector<256x64xf32> -> vector<256x64xf32>
    %c0_3 = arith.constant 0 : index
    %c0_4 = arith.constant 0 : index
    %4 = vector.load %arg3[%c0_3, %c0_4] : memref<1x64xf32, #tpu.memory_space<vmem>>, vector<1x64xf32>
    %5 = vector.broadcast %4 : vector<1x64xf32> to vector<256x64xf32>
    %6 = arith.addf %3, %5 : vector<256x64xf32>
    %cst_5 = arith.constant 0.000000e+00 : f32
    %7 = vector.broadcast %cst_5 : f32 to vector<256x64xf32>
    %8 = arith.maximumf %6, %7 : vector<256x64xf32>
    %9 = arith.truncf %8 : vector<256x64xf32> to vector<256x64xbf16>
    %c0_6 = arith.constant 0 : index
    %c0_7 = arith.constant 0 : index
    %10 = vector.load %arg4[%c0_6, %c0_7] : memref<64x16xbf16, #tpu.memory_space<vmem>>, vector<64x16xbf16>
    %cst_8 = arith.constant dense<0.000000e+00> : vector<256x16xf32>
    %11 = tpu.matmul %9, %10, %cst_8 {dimension_numbers = #tpu.dot_dimension_numbers<[1], [0], [0], [1], [0, 0, 1, 1], [], []>} : vector<256x64xbf16>, vector<64x16xbf16>, vector<256x16xf32> -> vector<256x16xf32>
    %c0_9 = arith.constant 0 : index
    %c0_10 = arith.constant 0 : index
    %12 = vector.load %arg5[%c0_9, %c0_10] : memref<1x16xf32, #tpu.memory_space<vmem>>, vector<1x16xf32>
    %13 = vector.broadcast %12 : vector<1x16xf32> to vector<256x16xf32>
    %14 = arith.addf %11, %13 : vector<256x16xf32>
    %c0_11 = arith.constant 0 : index
    %c0_12 = arith.constant 0 : index
    %15 = vector.load %arg6[%c0_11, %c0_12] : memref<256x16xf32, #tpu.memory_space<vmem>>, vector<256x16xf32>
    tpu.vector_store %arg6[%c0_11, %c0_12], %14 {strides = array<i32>} : memref<256x16xf32, #tpu.memory_space<vmem>>, vector<256x16xf32>,
    return
  }
  func.func @transform_0(%arg0: i32) -> (i32, i32) {
    %c0_i32 = arith.constant 0 : i32
    %c0_i32_0 = arith.constant 0 : i32
    return %arg0, %c0_i32 : i32, i32
  }
  func.func @transform_1(%arg0: i32) -> (i32, i32) {
    %c0_i32 = arith.constant 0 : i32
    %c0_i32_0 = arith.constant 0 : i32
    %c0_i32_1 = arith.constant 0 : i32
    return %c0_i32, %c0_i32_0 : i32, i32
  }
  func.func @transform_2(%arg0: i32) -> (i32, i32) {
    %c0_i32 = arith.constant 0 : i32
    %c0_i32_0 = arith.constant 0 : i32
    %c0_i32_1 = arith.constant 0 : i32
    return %c0_i32, %c0_i32_0 : i32, i32
  }
  func.func @transform_3(%arg0: i32) -> (i32, i32) {
    %c0_i32 = arith.constant 0 : i32
    %c0_i32_0 = arith.constant 0 : i32
    %c0_i32_1 = arith.constant 0 : i32
    return %c0_i32, %c0_i32_0 : i32, i32
  }
  func.func @transform_4(%arg0: i32) -> (i32, i32) {
    %c0_i32 = arith.constant 0 : i32
    %c0_i32_0 = arith.constant 0 : i32
    %c0_i32_1 = arith.constant 0 : i32
    return %c0_i32, %c0_i32_0 : i32, i32
  }
  func.func @transform_5(%arg0: i32) -> (i32, i32) {
    %c0_i32 = arith.constant 0 : i32
    %c0_i32_0 = arith.constant 0 : i32
    return %arg0, %c0_i32 : i32, i32
  }
}

</mosaic_0001>

<bundles_post_ra>
// kernel: tpu_custom_call.1
= control target key start
LH: loop header
LB: loop body
LE: loop exit
PB: predicated region body
PF: predicated region fallthrough
CT: control target
= control target key end

     0   :  { %s1590_s18 = smov 0   ;;  %s1592_s19 = smov 0   ;;  %s1991_s0 = inlined_call_operand.vmem [shape: f32[500,32], index: 0, kind: input, shape index: {}]   ;;  %s1992_s1 = inlined_call_operand.vmem [shape: bf16[32,64], index: 1, kind: input, shape index: {}]   ;;  %s1993_s2 = inlined_call_operand.vmem [shape: f32[1,64], index: 2, kind: input, shape index: {}]   ;;  %s1994_s3 = inlined_call_operand.vmem [shape: bf16[64,16], index: 3, kind: input, shape index: {}]   ;;  %s1995_s4 = inlined_call_operand.vmem [shape: f32[1,16], index: 4, kind: input, shape index: {}]   ;;  %s1996_s5 = inlined_call_operand.vmem [shape: f32[500,16], index: 5, kind: output, shape index: {}]  }
   0x1   :  { %s1594_s20 = smov 0  }
   0x2 LB: > { %s1603_s21 = sadd.s32 4294967295, %s1526_s20   ;;  %s1605_s22 = sadd.s32 1, %s1526_s20   ;;  %s1526_s20 = sphi %s1594_s20, %s2005_s20   ;;  %s1522_s19 = sphi %s1592_s19, %s2004_s19   ;;  %s1518_s18 = sphi %s1590_s18, %s2003_s18  }
   0x3   : > { %s129_s23 = ssub.s32 %s1526_s20, %s1605_s22  ;;  %s132_s24 = sadd.s32 1, %s1522_s19 }
   0x4   : > { %p130_p0 = scmp.eq.s32.totalorder %s129_s23, 0  ;;  %p142_p1 = scmp.ne.s32.totalorder %s1522_s19, %s1518_s18 }
   0x5   : > { %p143_p2 = scmp.eq.s32.totalorder %s1603_s21, 1  ;;  %p1200_p3 = scmp.ge.s32.totalorder %s1526_s20, 1 }
   0x6   : > { %s1613_s25 = scalar_select %p130_p0, %s1522_s19, %s132_s24  }
   0x7   : > { %p1615_p4 = por %p143_p2, %p142_p1  ;;  %p196_p5 = scmp.lt.s32.totalorder %s1526_s20, 3 }
   0x9   : > { %p197_p6 = pnand %p1200_p3, %p196_p5 }
   0xa   : > { %v1466_v0 = vld [vmem:[%s1992_s1] sm:$0xff] (!%p197_p6)   ;;  %s1623_s29 = sshll.u32 (!%p197_p6), %s1603_s21, 5  ;;  %v1467_v1 = vld [vmem:[%s1992_s1 + $0x8] sm:$0xff] (!%p197_p6)   ;;  %vm318_vm0 = vcmask (!%p197_p6), 261120   ;;  %v1470_v52 = vld [vmem:[%s1994_s3 + $0x10] sm:$0xff] (!%p197_p6)   ;;  %vm615_vm1 = vcmask (!%p197_p6), 523264  }
   0xb   : > { %200 = sbr.rel (%p197_p6) target bundleno = 578 (0x242), region = 40  ;;  %p232_p7 = scmp.lt.s32.totalorder (!%p197_p6), %s1623_s29, 62  ;;  %1302 = vmatprep.subr.bf16.mxu0 (!%p197_p6), %v1466_v0  ;;  %v1468_v2 = vld [vmem:[%s1994_s3] sm:$0xff] (!%p197_p6)   ;;  %v1469_v3 = vld [vmem:[%s1994_s3 + $0x8] sm:$0xff] (!%p197_p6)   ;;  %v1471_v53 = vld [vmem:[%s1994_s3 + $0x18] sm:$0xff] (!%p197_p6)   ;;  %vm825_vm2 = vcmask (!%p197_p6), 130048  }
   0xc   : > { %1303 = vmatpush3.bf16.msra.mxu0 (!%p197_p6), %v1466_v0  ;;  %1338 = vmatprep.subr.bf16.mxu1 (!%p197_p6), %v1468_v2  ;;  %v1698_v54 = vld [vmem:[%s1993_s2] ss:$0 sm:$0xff] (!%p197_p6)  ;;  %s224_s28 = sand.u32 (!%p197_p6), 1, %s1518_s18  }
   0xd   : > { %1304 = vmatprep.subr.bf16.mxu0 (!%p197_p6), %v1467_v1  ;;  %1339 = vmatpush3.bf16.msra.mxu1 (!%p197_p6), %v1468_v2  ;;  %s1201_s30 = sshll.u32 (!%p197_p6), %s224_s28, 8 }
   0xe   : > { %1340 = vmatprep.subr.bf16.mxu1 (!%p197_p6), %v1469_v3  ;;  %s1756_s8 = scalar_lea.vmem (!%p197_p6), [#allocation2], %s1201_s30  }
  0x10   : > { %1305 = vmatpush3.bf16.msra.mxu0 (!%p197_p6), %v1467_v1 }
  0x11   : > { %1341 = vmatpush3.bf16.msra.mxu1 (!%p197_p6), %v1469_v3 }
  0x12   : > { %s233_s9 = scalar_select %p232_p7, %s1623_s29, 62  ;;  %1342 = vmatprep.subr.bf16.mxu1 %v1470_v52 }
  0x13   : > { %s866_s18 = ssub.s32 (%p1615_p4), 63, %s1623_s29 }
  0x14   : > { %s1203_s12 = sshll.u32 %s233_s9, 3  ;;  %s1261_s9 = sshll.u32 (%p1615_p4), %s1603_s21, 8 }
  0x15   : > { %s1639_s15 = scalar_lea.vmem %s1991_s0, %s1203_s12  ;;  %1343 = vmatpush3.bf16.msra.mxu1 %v1470_v52  ;;  %p867_p8 = scmp.lt.s32.totalorder (%p1615_p4), %s866_s18, 32 }
  0x16   : > { %v247_v4 = vld [vmem:[%s1639_s15] sm:$0xff]  ;;  %v248_v5 = vld [vmem:[%s1639_s15 + $0x8] sm:$0xff]  ;;  %v249_v6 = vld [vmem:[%s1639_s15 + $0x10] sm:$0xff]  ;;  %1344 = vmatprep.subr.bf16.mxu1 %v1471_v53  ;;  %s1859_s12 = scalar_lea.vmem (%p1615_p4), %s1996_s5, %s1261_s9  }
  0x17   : > { %v279_v7 = vpack.c.bf16 %v248_v5, %v247_v4  ;;  %v250_v8 = vld [vmem:[%s1639_s15 + $0x18] sm:$0xff]  ;;  %v251_v9 = vld [vmem:[%s1639_s15 + $0x20] sm:$0xff]  ;;  %v252_v10 = vld [vmem:[%s1639_s15 + $0x28] sm:$0xff] }
  0x18   : > { %v280_v11 = vpack.c.bf16 %v250_v8, %v249_v6  ;;  %v281_v12 = vpack.c.bf16 %v252_v10, %v251_v9  ;;  %v253_v13 = vld [vmem:[%s1639_s15 + $0x30] sm:$0xff]  ;;  %v254_v14 = vld [vmem:[%s1639_s15 + $0x38] sm:$0xff]  ;;  %v255_v15 = vld [vmem:[%s1639_s15 + $0x40] sm:$0xff] }
  0x19   : > { %1306 = vmatprep.mubr.msk.bf16.mxu0 %vm318_vm0, %v279_v7  ;;  %v256_v16 = vld [vmem:[%s1639_s15 + $0x48] sm:$0xff]  ;;  %v282_v17 = vpack.c.bf16 %v254_v14, %v253_v13  ;;  %v257_v19 = vld [vmem:[%s1639_s15 + $0x50] sm:$0xff]  ;;  %v258_v20 = vld [vmem:[%s1639_s15 + $0x58] sm:$0xff]  ;;  %1345 = vmatpush3.bf16.msra.mxu1 %v1471_v53 }
  0x1a   : > { %1307 = vmatmul.mubr.msk.bf16.vlgmr.msra.gmra.mrb[0].mxu0 %vm318_vm0, %v280_v11  ;;  %v283_v18 = vpack.c.bf16 %v256_v16, %v255_v15  ;;  %v259_v21 = vld [vmem:[%s1639_s15 + $0x60] sm:$0xff]  ;;  %v260_v22 = vld [vmem:[%s1639_s15 + $0x68] sm:$0xff]  ;;  %v284_v23 = vpack.c.bf16 %v258_v20, %v257_v19  ;;  %v261_v25 = vld [vmem:[%s1639_s15 + $0x70] sm:$0xff] }
  0x1b   : > { %1310 = vmatprep.mubr.msk.bf16.mxu0 %vm318_vm0, %v281_v12  ;;  %v285_v24 = vpack.c.bf16 %v260_v22, %v259_v21  ;;  %v262_v26 = vld [vmem:[%s1639_s15 + $0x78] sm:$0xff]  ;;  %v263_v27 = vld [vmem:[%s1639_s15 + $0x80] sm:$0xff]  ;;  %v264_v28 = vld [vmem:[%s1639_s15 + $0x88] sm:$0xff] }
  0x1c   : > { %v286_v29 = vpack.c.bf16 %v262_v26, %v261_v25  ;;  %v287_v30 = vpack.c.bf16 %v264_v28, %v263_v27  ;;  %v265_v31 = vld [vmem:[%s1639_s15 + $0x90] sm:$0xff]  ;;  %v266_v32 = vld [vmem:[%s1639_s15 + $0x98] sm:$0xff]  ;;  %v267_v33 = vld [vmem:[%s1639_s15 + $0xa0] sm:$0xff] }
  0x1d   : > { %v268_v34 = vld [vmem:[%s1639_s15 + $0xa8] sm:$0xff]  ;;  %v288_v35 = vpack.c.bf16 %v266_v32, %v265_v31  ;;  %v269_v37 = vld [vmem:[%s1639_s15 + $0xb0] sm:$0xff]  ;;  %v270_v38 = vld [vmem:[%s1639_s15 + $0xb8] sm:$0xff] }
  0x1e   : > { %v289_v36 = vpack.c.bf16 %v268_v34, %v267_v33  ;;  %v271_v39 = vld [vmem:[%s1639_s15 + $0xc0] sm:$0xff]  ;;  %v272_v40 = vld [vmem:[%s1639_s15 + $0xc8] sm:$0xff]  ;;  %v290_v41 = vpack.c.bf16 %v270_v38, %v269_v37  ;;  %v273_v43 = vld [vmem:[%s1639_s15 + $0xd0] sm:$0xff] }
  0x1f   : > { %v291_v42 = vpack.c.bf16 %v272_v40, %v271_v39  ;;  %v274_v44 = vld [vmem:[%s1639_s15 + $0xd8] sm:$0xff]  ;;  %v275_v45 = vld [vmem:[%s1639_s15 + $0xe0] sm:$0xff]  ;;  %v276_v46 = vld [vmem:[%s1639_s15 + $0xe8] sm:$0xff] }
  0x20   : > { %v292_v47 = vpack.c.bf16 %v274_v44, %v273_v43  ;;  %v293_v48 = vpack.c.bf16 %v276_v46, %v275_v45  ;;  %v277_v49 = vld [vmem:[%s1639_s15 + $0xf0] sm:$0xff]  ;;  %v278_v50 = vld [vmem:[%s1639_s15 + $0xf8] sm:$0xff] }
  0x21   : > { %v294_v51 = vpack.c.bf16 %v278_v50, %v277_v49 }
  0x22   : > { %1311 = vmatmul.mubr.msk.bf16.gmra.mrb[4].mxu0 %vm318_vm0, %v282_v17 }
  0x23   : > { %1314 = vmatprep.mubr.msk.bf16.mxu0 %vm318_vm0, %v283_v18 }
  0x2a   : > { %1315 = vmatmul.mubr.msk.bf16.gmra.mrb[8].mxu0 %vm318_vm0, %v284_v23 }
  0x2b   : > { %1318 = vmatprep.mubr.msk.bf16.mxu0 %vm318_vm0, %v285_v24 }
  0x32   : > { %1319 = vmatmul.mubr.msk.bf16.gmra.mrb[12].mxu0 %vm318_vm0, %v286_v29 }
  0x33   : > { %1322 = vmatprep.mubr.msk.bf16.mxu0 %vm318_vm0, %v287_v30 }
  0x3a   : > { %1323 = vmatmul.mubr.msk.bf16.gmra.mrb[16].mxu0 %vm318_vm0, %v288_v35 }
  0x3b   : > { %1326 = vmatprep.mubr.msk.bf16.mxu0 %vm318_vm0, %v289_v36 }
  0x42   : > { %1327 = vmatmul.mubr.msk.bf16.gmra.mrb[20].mxu0 %vm318_vm0, %v290_v41 }
  0x43   : > { %1330 = vmatprep.mubr.msk.bf16.mxu0 %vm318_vm0, %v291_v42 }
  0x4a   : > { %1331 = vmatmul.mubr.msk.bf16.gmra.mrb[24].mxu0 %vm318_vm0, %v292_v47 }
  0x4b   : > { %1334 = vmatprep.mubr.msk.bf16.mxu0 %vm318_vm0, %v293_v48 }
  0x52   : > { %1335 = vmatmul.mubr.msk.bf16.gmra.mrb[28].mxu0 %vm318_vm0, %v294_v51 }
  0xed   : > { %v1308_v55 = vpop.f32.mrb[0].mxu0 }
  0xee   : > { %v410_v56 = vadd.f32 %v1308_v55, %v1698_v54  ;;  %v401_v57 = vpop.f32.mrb[1].mxu0 }
  0xef   : > { %v402_v58 = vadd.f32 %v1698_v54, %v401_v57  ;;  %v1309_v59 = vpop.f32.mrb[2].mxu0 }
  0xf0   : > { %v413_v60 = vadd.f32 %v1309_v59, %v1698_v54  ;;  %v404_v61 = vpop.f32.mrb[3].mxu0  ;;  %v530_v63 = vmax.f32 %v410_v56, 0.0 }
  0xf1   : > { %v405_v62 = vadd.f32 %v1698_v54, %v404_v61  ;;  %v528_v1 = vmax.f32 %v402_v58, 0.0 }
  0xf2   : > { %v531_v0 = vmax.f32 %v413_v60, 0.0 }
  0xf3   : > { %v529_v2 = vmax.f32 %v405_v62, 0.0 }
  0xf4   : > { %v561_v3 = vpack.c.bf16 %v531_v0, %v530_v63 }
  0xf5   : > { %v1312_v4 = vpop.f32.mrb[4].mxu0  ;;  %v560_v5 = vpack.c.bf16 %v529_v2, %v528_v1 }
  0xf6   : > { %v426_v6 = vadd.f32 %v1312_v4, %v1698_v54  ;;  %v417_v7 = vpop.f32.mrb[5].mxu0 }
  0xf7   : > { %v418_v8 = vadd.f32 %v1698_v54, %v417_v7  ;;  %v1313_v9 = vpop.f32.mrb[6].mxu0  ;;  %1346 = vmatprep.mubr.msk.bf16.mxu1 %vm615_vm1, %v560_v5 }
  0xf8   : > { %v429_v10 = vadd.f32 %v1313_v9, %v1698_v54  ;;  %v420_v11 = vpop.f32.mrb[7].mxu0  ;;  %1347 = vmatmul.mubr.msk.bf16.vlgmr.msra.gmra.mrb[0].mxu1 %vm615_vm1, %v561_v3  ;;  %v534_v13 = vmax.f32 %v426_v6, 0.0 }
  0xf9   : > { %v421_v12 = vadd.f32 %v1698_v54, %v420_v11  ;;  %v532_v15 = vmax.f32 %v418_v8, 0.0 }
  0xfa   : > { %v535_v14 = vmax.f32 %v429_v10, 0.0 }
  0xfb   : > { %v533_v16 = vmax.f32 %v421_v12, 0.0 }
  0xfc   : > { %v563_v17 = vpack.c.bf16 %v535_v14, %v534_v13 }
  0xfd   : > { %v562_v18 = vpack.c.bf16 %v533_v16, %v532_v15  ;;  %v1316_v19 = vpop.f32.mrb[8].mxu0 }
  0xfe   : > { %v442_v20 = vadd.f32 %v1316_v19, %v1698_v54  ;;  %v433_v21 = vpop.f32.mrb[9].mxu0 }
  0xff   : > { %v434_v22 = vadd.f32 %v1698_v54, %v433_v21  ;;  %v1317_v23 = vpop.f32.mrb[10].mxu0  ;;  %1350 = vmatprep.mubr.msk.bf16.mxu1 %vm615_vm1, %v562_v18 }
 0x100   : > { %v445_v24 = vadd.f32 %v1317_v23, %v1698_v54  ;;  %v436_v25 = vpop.f32.mrb[11].mxu0  ;;  %1351 = vmatmul.mubr.msk.bf16.gmra.mrb[4].mxu1 %vm615_vm1, %v563_v17  ;;  %v538_v27 = vmax.f32 %v442_v20, 0.0 }
 0x101   : > { %v437_v26 = vadd.f32 %v1698_v54, %v436_v25  ;;  %v536_v29 = vmax.f32 %v434_v22, 0.0 }
 0x102   : > { %v539_v28 = vmax.f32 %v445_v24, 0.0 }
 0x103   : > { %v537_v30 = vmax.f32 %v437_v26, 0.0 }
 0x104   : > { %v565_v31 = vpack.c.bf16 %v539_v28, %v538_v27 }
 0x105   : > { %v564_v32 = vpack.c.bf16 %v537_v30, %v536_v29  ;;  %v1320_v33 = vpop.f32.mrb[12].mxu0 }
 0x106   : > { %v458_v34 = vadd.f32 %v1320_v33, %v1698_v54  ;;  %v449_v35 = vpop.f32.mrb[13].mxu0 }
 0x107   : > { %v450_v36 = vadd.f32 %v1698_v54, %v449_v35  ;;  %v1321_v37 = vpop.f32.mrb[14].mxu0  ;;  %1354 = vmatprep.mubr.msk.bf16.mxu1 %vm615_vm1, %v564_v32 }
 0x108   : > { %v461_v38 = vadd.f32 %v1321_v37, %v1698_v54  ;;  %v452_v39 = vpop.f32.mrb[15].mxu0  ;;  %1355 = vmatmul.mubr.msk.bf16.gmra.mrb[8].mxu1 %vm615_vm1, %v565_v31  ;;  %v542_v41 = vmax.f32 %v458_v34, 0.0 }
 0x109   : > { %v453_v40 = vadd.f32 %v1698_v54, %v452_v39  ;;  %v540_v43 = vmax.f32 %v450_v36, 0.0 }
 0x10a   : > { %v543_v42 = vmax.f32 %v461_v38, 0.0 }
 0x10b   : > { %v541_v44 = vmax.f32 %v453_v40, 0.0  ;;  %v1752_v40 = vld [vmem:[%s1995_s4] ss:$0 sm:$0xff] }
 0x10c   : > { %v567_v45 = vpack.c.bf16 %v543_v42, %v542_v41 }
 0x10d   : > { %v566_v46 = vpack.c.bf16 %v541_v44, %v540_v43  ;;  %v1324_v47 = vpop.f32.mrb[16].mxu0 }
 0x10e   : > { %v474_v48 = vadd.f32 %v1324_v47, %v1698_v54  ;;  %v465_v49 = vpop.f32.mrb[17].mxu0 }
 0x10f   : > { %v466_v50 = vadd.f32 %v1698_v54, %v465_v49  ;;  %v1325_v51 = vpop.f32.mrb[18].mxu0  ;;  %1358 = vmatprep.mubr.msk.bf16.mxu1 %vm615_vm1, %v566_v46 }
 0x110   : > { %v477_v52 = vadd.f32 %v1325_v51, %v1698_v54  ;;  %v468_v53 = vpop.f32.mrb[19].mxu0  ;;  %1359 = vmatmul.mubr.msk.bf16.gmra.mrb[12].mxu1 %vm615_vm1, %v567_v45  ;;  %v546_v56 = vmax.f32 %v474_v48, 0.0 }
 0x111   : > { %v469_v55 = vadd.f32 %v1698_v54, %v468_v53  ;;  %v544_v58 = vmax.f32 %v466_v50, 0.0 }
 0x112   : > { %v547_v57 = vmax.f32 %v477_v52, 0.0 }
 0x113   : > { %v545_v59 = vmax.f32 %v469_v55, 0.0 }
 0x114   : > { %v569_v60 = vpack.c.bf16 %v547_v57, %v546_v56 }
 0x115   : > { %v568_v61 = vpack.c.bf16 %v545_v59, %v544_v58  ;;  %v1328_v62 = vpop.f32.mrb[20].mxu0 }
 0x116   : > { %v490_v63 = vadd.f32 %v1328_v62, %v1698_v54  ;;  %v481_v0 = vpop.f32.mrb[21].mxu0 }
 0x117   : > { %v482_v1 = vadd.f32 %v1698_v54, %v481_v0  ;;  %v1329_v2 = vpop.f32.mrb[22].mxu0  ;;  %1362 = vmatprep.mubr.msk.bf16.mxu1 %vm615_vm1, %v568_v61 }
 0x118   : > { %v493_v3 = vadd.f32 %v1329_v2, %v1698_v54  ;;  %v484_v4 = vpop.f32.mrb[23].mxu0  ;;  %1363 = vmatmul.mubr.msk.bf16.gmra.mrb[16].mxu1 %vm615_vm1, %v569_v60  ;;  %v550_v6 = vmax.f32 %v490_v63, 0.0 }
 0x119   : > { %v485_v5 = vadd.f32 %v1698_v54, %v484_v4  ;;  %v548_v8 = vmax.f32 %v482_v1, 0.0 }
 0x11a   : > { %v551_v7 = vmax.f32 %v493_v3, 0.0 }
 0x11b   : > { %v549_v9 = vmax.f32 %v485_v5, 0.0 }
 0x11c   : > { %v571_v10 = vpack.c.bf16 %v551_v7, %v550_v6 }
 0x11d   : > { %v570_v11 = vpack.c.bf16 %v549_v9, %v548_v8  ;;  %v1332_v12 = vpop.f32.mrb[24].mxu0 }
 0x11e   : > { %v506_v13 = vadd.f32 %v1332_v12, %v1698_v54  ;;  %v497_v14 = vpop.f32.mrb[25].mxu0 }
 0x11f   : > { %v498_v15 = vadd.f32 %v1698_v54, %v497_v14  ;;  %v1333_v16 = vpop.f32.mrb[26].mxu0  ;;  %1366 = vmatprep.mubr.msk.bf16.mxu1 %vm615_vm1, %v570_v11 }
 0x120   : > { %v509_v17 = vadd.f32 %v1333_v16, %v1698_v54  ;;  %v500_v18 = vpop.f32.mrb[27].mxu0  ;;  %1367 = vmatmul.mubr.msk.bf16.gmra.mrb[20].mxu1 %vm615_vm1, %v571_v10  ;;  %v554_v20 = vmax.f32 %v506_v13, 0.0 }
 0x121   : > { %v501_v19 = vadd.f32 %v1698_v54, %v500_v18  ;;  %v552_v22 = vmax.f32 %v498_v15, 0.0 }
 0x122   : > { %v555_v21 = vmax.f32 %v509_v17, 0.0 }
 0x123   : > { %v553_v23 = vmax.f32 %v501_v19, 0.0 }
 0x124   : > { %v573_v24 = vpack.c.bf16 %v555_v21, %v554_v20 }
 0x125   : > { %v572_v25 = vpack.c.bf16 %v553_v23, %v552_v22  ;;  %v1336_v26 = vpop.f32.mrb[28].mxu0 }
 0x126   : > { %v522_v27 = vadd.f32 %v1336_v26, %v1698_v54  ;;  %v513_v28 = vpop.f32.mrb[29].mxu0 }
 0x127   : > { %v514_v29 = vadd.f32 %v1698_v54, %v513_v28  ;;  %v1337_v30 = vpop.f32.mrb[30].mxu0  ;;  %1370 = vmatprep.mubr.msk.bf16.mxu1 %vm615_vm1, %v572_v25 }
 0x128   : > { %v525_v31 = vadd.f32 %v1337_v30, %v1698_v54  ;;  %v516_v32 = vpop.f32.mrb[31].mxu0  ;;  %1371 = vmatmul.mubr.msk.bf16.gmra.mrb[24].mxu1 %vm615_vm1, %v573_v24  ;;  %v558_v34 = vmax.f32 %v522_v27, 0.0 }
 0x129   : > { %v517_v33 = vadd.f32 %v1698_v54, %v516_v32  ;;  %v556_v36 = vmax.f32 %v514_v29, 0.0 }
 0x12a   : > { %v559_v35 = vmax.f32 %v525_v31, 0.0 }
 0x12b   : > { %v557_v37 = vmax.f32 %v517_v33, 0.0 }
 0x12c   : > { %v575_v38 = vpack.c.bf16 %v559_v35, %v558_v34 }
 0x12d   : > { %v574_v39 = vpack.c.bf16 %v557_v37, %v556_v36 }
 0x12f   : > { %1374 = vmatprep.mubr.msk.bf16.mxu1 %vm615_vm1, %v574_v39 }
 0x130   : > { %1375 = vmatmul.mubr.msk.bf16.gmra.mrb[28].mxu1 %vm615_vm1, %v575_v38 }
 0x1cb   : > { %v1348_v41 = vpop.f32.mrb[0].mxu1 }
 0x1cc   : > { %v707_v54 = vadd.f32 %v1348_v41, %v1752_v40  ;;  %v698_v42 = vpop.f32.mrb[1].mxu1 }
 0x1cd   : > { %v699_v43 = vadd.f32 %v1752_v40, %v698_v42  ;;  %v1349_v44 = vpop.f32.mrb[2].mxu1 }
 0x1ce   : > { %828 = vst.msk [vmem:[%s1756_s8 + $0x10] sm:$0xff] %vm825_vm2, %v707_v54  ;;  %v710_v45 = vadd.f32 %v1349_v44, %v1752_v40  ;;  %v701_v46 = vpop.f32.mrb[3].mxu1 }
 0x1cf   : > { %826 = vst.msk [vmem:[%s1756_s8] sm:$0xff] %vm825_vm2, %v699_v43  ;;  %v702_v47 = vadd.f32 %v1752_v40, %v701_v46 }
 0x1d0   : > { %829 = vst.msk [vmem:[%s1756_s8 + $0x18] sm:$0xff] %vm825_vm2, %v710_v45 }
 0x1d1   : > { %827 = vst.msk [vmem:[%s1756_s8 + $0x8] sm:$0xff] %vm825_vm2, %v702_v47 }
 0x1d3   : > { %v1352_v48 = vpop.f32.mrb[4].mxu1 }
 0x1d4   : > { %v723_v49 = vadd.f32 %v1352_v48, %v1752_v40  ;;  %v714_v50 = vpop.f32.mrb[5].mxu1 }
 0x1d5   : > { %v715_v51 = vadd.f32 %v1752_v40, %v714_v50  ;;  %v1353_v52 = vpop.f32.mrb[6].mxu1 }
 0x1d6   : > { %832 = vst.msk [vmem:[%s1756_s8 + $0x30] sm:$0xff] %vm825_vm2, %v723_v49  ;;  %v726_v53 = vadd.f32 %v1353_v52, %v1752_v40  ;;  %v717_v55 = vpop.f32.mrb[7].mxu1 }
 0x1d7   : > { %830 = vst.msk [vmem:[%s1756_s8 + $0x20] sm:$0xff] %vm825_vm2, %v715_v51  ;;  %v718_v56 = vadd.f32 %v1752_v40, %v717_v55 }
 0x1d8   : > { %833 = vst.msk [vmem:[%s1756_s8 + $0x38] sm:$0xff] %vm825_vm2, %v726_v53 }
 0x1d9   : > { %831 = vst.msk [vmem:[%s1756_s8 + $0x28] sm:$0xff] %vm825_vm2, %v718_v56 }
 0x1db   : > { %v1356_v57 = vpop.f32.mrb[8].mxu1 }
 0x1dc   : > { %v739_v58 = vadd.f32 %v1356_v57, %v1752_v40  ;;  %v730_v59 = vpop.f32.mrb[9].mxu1 }
 0x1dd   : > { %v731_v60 = vadd.f32 %v1752_v40, %v730_v59  ;;  %v1357_v61 = vpop.f32.mrb[10].mxu1 }
 0x1de   : > { %836 = vst.msk [vmem:[%s1756_s8 + $0x50] sm:$0xff] %vm825_vm2, %v739_v58  ;;  %v742_v62 = vadd.f32 %v1357_v61, %v1752_v40  ;;  %v733_v63 = vpop.f32.mrb[11].mxu1 }
 0x1df   : > { %834 = vst.msk [vmem:[%s1756_s8 + $0x40] sm:$0xff] %vm825_vm2, %v731_v60  ;;  %v734_v0 = vadd.f32 %v1752_v40, %v733_v63 }
 0x1e0   : > { %837 = vst.msk [vmem:[%s1756_s8 + $0x58] sm:$0xff] %vm825_vm2, %v742_v62 }
 0x1e1   : > { %835 = vst.msk [vmem:[%s1756_s8 + $0x48] sm:$0xff] %vm825_vm2, %v734_v0 }
 0x1e3   : > { %v1360_v1 = vpop.f32.mrb[12].mxu1 }
 0x1e4   : > { %v755_v2 = vadd.f32 %v1360_v1, %v1752_v40  ;;  %v746_v3 = vpop.f32.mrb[13].mxu1 }
 0x1e5   : > { %v747_v4 = vadd.f32 %v1752_v40, %v746_v3  ;;  %v1361_v5 = vpop.f32.mrb[14].mxu1 }
 0x1e6   : > { %840 = vst.msk [vmem:[%s1756_s8 + $0x70] sm:$0xff] %vm825_vm2, %v755_v2  ;;  %v758_v6 = vadd.f32 %v1361_v5, %v1752_v40  ;;  %v749_v7 = vpop.f32.mrb[15].mxu1 }
 0x1e7   : > { %838 = vst.msk [vmem:[%s1756_s8 + $0x60] sm:$0xff] %vm825_vm2, %v747_v4  ;;  %v750_v8 = vadd.f32 %v1752_v40, %v749_v7 }
 0x1e8   : > { %841 = vst.msk [vmem:[%s1756_s8 + $0x78] sm:$0xff] %vm825_vm2, %v758_v6 }
 0x1e9   : > { %839 = vst.msk [vmem:[%s1756_s8 + $0x68] sm:$0xff] %vm825_vm2, %v750_v8 }
 0x1eb   : > { %v1364_v9 = vpop.f32.mrb[16].mxu1 }
 0x1ec   : > { %v771_v10 = vadd.f32 %v1364_v9, %v1752_v40  ;;  %v762_v11 = vpop.f32.mrb[17].mxu1 }
 0x1ed   : > { %v763_v12 = vadd.f32 %v1752_v40, %v762_v11  ;;  %v1365_v13 = vpop.f32.mrb[18].mxu1 }
 0x1ee   : > { %844 = vst.msk [vmem:[%s1756_s8 + $0x90] sm:$0xff] %vm825_vm2, %v771_v10  ;;  %v774_v14 = vadd.f32 %v1365_v13, %v1752_v40  ;;  %v765_v15 = vpop.f32.mrb[19].mxu1 }
 0x1ef   : > { %842 = vst.msk [vmem:[%s1756_s8 + $0x80] sm:$0xff] %vm825_vm2, %v763_v12  ;;  %v766_v16 = vadd.f32 %v1752_v40, %v765_v15 }
 0x1f0   : > { %845 = vst.msk [vmem:[%s1756_s8 + $0x98] sm:$0xff] %vm825_vm2, %v774_v14 }
 0x1f1   : > { %843 = vst.msk [vmem:[%s1756_s8 + $0x88] sm:$0xff] %vm825_vm2, %v766_v16 }
 0x1f3   : > { %v1368_v17 = vpop.f32.mrb[20].mxu1 }
 0x1f4   : > { %v787_v18 = vadd.f32 %v1368_v17, %v1752_v40  ;;  %v778_v19 = vpop.f32.mrb[21].mxu1 }
 0x1f5   : > { %v779_v20 = vadd.f32 %v1752_v40, %v778_v19  ;;  %v1369_v21 = vpop.f32.mrb[22].mxu1 }
 0x1f6   : > { %848 = vst.msk [vmem:[%s1756_s8 + $0xb0] sm:$0xff] %vm825_vm2, %v787_v18  ;;  %v790_v22 = vadd.f32 %v1369_v21, %v1752_v40  ;;  %v781_v23 = vpop.f32.mrb[23].mxu1 }
 0x1f7   : > { %846 = vst.msk [vmem:[%s1756_s8 + $0xa0] sm:$0xff] %vm825_vm2, %v779_v20  ;;  %v782_v24 = vadd.f32 %v1752_v40, %v781_v23 }
 0x1f8   : > { %849 = vst.msk [vmem:[%s1756_s8 + $0xb8] sm:$0xff] %vm825_vm2, %v790_v22 }
 0x1f9   : > { %847 = vst.msk [vmem:[%s1756_s8 + $0xa8] sm:$0xff] %vm825_vm2, %v782_v24 }
 0x1fb   : > { %v1372_v25 = vpop.f32.mrb[24].mxu1 }
 0x1fc   : > { %v803_v26 = vadd.f32 %v1372_v25, %v1752_v40  ;;  %v794_v27 = vpop.f32.mrb[25].mxu1 }
 0x1fd   : > { %v795_v28 = vadd.f32 %v1752_v40, %v794_v27  ;;  %v1373_v29 = vpop.f32.mrb[26].mxu1 }
 0x1fe   : > { %852 = vst.msk [vmem:[%s1756_s8 + $0xd0] sm:$0xff] %vm825_vm2, %v803_v26  ;;  %v806_v30 = vadd.f32 %v1373_v29, %v1752_v40  ;;  %v797_v31 = vpop.f32.mrb[27].mxu1 }
 0x1ff   : > { %850 = vst.msk [vmem:[%s1756_s8 + $0xc0] sm:$0xff] %vm825_vm2, %v795_v28  ;;  %v798_v32 = vadd.f32 %v1752_v40, %v797_v31 }
 0x200   : > { %853 = vst.msk [vmem:[%s1756_s8 + $0xd8] sm:$0xff] %vm825_vm2, %v806_v30 }
 0x201   : > { %851 = vst.msk [vmem:[%s1756_s8 + $0xc8] sm:$0xff] %vm825_vm2, %v798_v32 }
 0x203   : > { %v1376_v33 = vpop.f32.mrb[28].mxu1  ;;  %864 = sbr.rel (!%p1615_p4) target bundleno = 578 (0x242), region = 44 }
 0x204   : > { %v819_v34 = vadd.f32 %v1376_v33, %v1752_v40  ;;  %v810_v35 = vpop.f32.mrb[29].mxu1 }
 0x205   : > { %v811_v36 = vadd.f32 %v1752_v40, %v810_v35  ;;  %v1377_v37 = vpop.f32.mrb[30].mxu1 }
 0x206   : > { %856 = vst.msk [vmem:[%s1756_s8 + $0xf0] sm:$0xff] %vm825_vm2, %v819_v34  ;;  %v822_v38 = vadd.f32 %v1377_v37, %v1752_v40  ;;  %v813_v39 = vpop.f32.mrb[31].mxu1 }
 0x207   : > { %854 = vst.msk [vmem:[%s1756_s8 + $0xe0] sm:$0xff] %vm825_vm2, %v811_v36  ;;  %v814_v41 = vadd.f32 %v1752_v40, %v813_v39 }
 0x208   : > { %857 = vst.msk [vmem:[%s1756_s8 + $0xf8] sm:$0xff] %vm825_vm2, %v822_v38 }
 0x209   : > { %855 = vst.msk [vmem:[%s1756_s8 + $0xe8] sm:$0xff] %vm825_vm2, %v814_v41 }
 0x20a   : > { %s2007_s18 = smov (!%p867_p8, %s866_s18), 32 }
 0x20b   : > { %s1246_s13 = sshll.u32 %s2007_s18, 7 }
 0x20c   : > { %p1249_p9 = scmp.eq.s32.totalorder %s1246_s13, 0 }
 0x20d   : > { %s1865_s14 = sshrl.u32 (!%p1249_p9), %s2007_s18, 5 }
 0x20e   : > { %875 = sbr.rel (%p1249_p9) target bundleno = 578 (0x242), region = 48  ;;  %p1250_p10 = scmp.le.s32.totalorder (!%p1249_p9), %s1865_s14, 0 }
 0x215   : > { %1153 = sbr.rel (%p1250_p10) target bundleno = 557 (0x22d), region = 124  ;;  %s1998_s21 = smov (!%p1250_p10), %s1859_s12 }
 0x216   : > { %s1999_s26 = smov (!%p1250_p10), %s1756_s8  ;;  %s1874_s29 = smov (!%p1250_p10), 0  }
 0x217   : > { %s1876_s15 = smov (!%p1250_p10), 0  }
 0x21c LB: >> { %v999_v40 = vld [vmem:[%s1534_s26] sm:$0xff]  ;;  %v1001_v54 = vld [vmem:[%s1534_s26 + $0x8] sm:$0xff]  ;;  %v1003_v42 = vld [vmem:[%s1534_s26 + $0x10] sm:$0xff]  ;;  %s1063_s16 = sadd.s32 1, %s1538_s29  ;;  %s993_s15 = sadd.s32 1, %s1542_s15   ;;  %s1542_s15 = sphi %s1876_s15, %s993_s15   ;;  %s1538_s29 = sphi %s1874_s29, %s2002_s29   ;;  %s1534_s26 = sphi %s1999_s26, %s2001_s26   ;;  %s1530_s21 = sphi %s1998_s21, %s2000_s21  }
 0x21d   : >> { %1000 = vst [vmem:[%s1530_s21] sm:$0xff] %v999_v40  ;;  %1002 = vst [vmem:[%s1530_s21 + $0x8] sm:$0xff] %v1001_v54  ;;  %v1005_v43 = vld [vmem:[%s1534_s26 + $0x18] sm:$0xff]  ;;  %v1007_v44 = vld [vmem:[%s1534_s26 + $0x20] sm:$0xff]  ;;  %p1064_p11 = scmp.ge.s32.totalorder %s1063_s16, %s1865_s14  ;;  %p992_p12 = scmp.ge.s32.totalorder %s993_s15, %s1865_s14 }
 0x21e   : >> { %1004 = vst [vmem:[%s1530_s21 + $0x10] sm:$0xff] %v1003_v42  ;;  %v1009_v45 = vld [vmem:[%s1534_s26 + $0x28] sm:$0xff]  ;;  %1006 = vst [vmem:[%s1530_s21 + $0x18] sm:$0xff] %v1005_v43  ;;  %v1011_v46 = vld [vmem:[%s1534_s26 + $0x30] sm:$0xff] }
 0x21f   : >> { %1008 = vst [vmem:[%s1530_s21 + $0x20] sm:$0xff] %v1007_v44  ;;  %1010 = vst [vmem:[%s1530_s21 + $0x28] sm:$0xff] %v1009_v45  ;;  %v1013_v47 = vld [vmem:[%s1534_s26 + $0x38] sm:$0xff]  ;;  %v1015_v48 = vld [vmem:[%s1534_s26 + $0x40] sm:$0xff]  ;;  %s2009_s16 = smov (%p1064_p11, %s1063_s16), 0 }
 0x220   : >> { %1012 = vst [vmem:[%s1530_s21 + $0x30] sm:$0xff] %v1011_v46  ;;  %1014 = vst [vmem:[%s1530_s21 + $0x38] sm:$0xff] %v1013_v47  ;;  %v1017_v49 = vld [vmem:[%s1534_s26 + $0x48] sm:$0xff]  ;;  %v1019_v50 = vld [vmem:[%s1534_s26 + $0x50] sm:$0xff]  ;;  %s1251_s17 = sshll.u32 %s2009_s16, 8  ;;  %s2002_s29 = smov %s2009_s16 }
 0x221   : >> { %1016 = vst [vmem:[%s1530_s21 + $0x40] sm:$0xff] %v1015_v48  ;;  %v1021_v51 = vld [vmem:[%s1534_s26 + $0x58] sm:$0xff]  ;;  %1018 = vst [vmem:[%s1530_s21 + $0x48] sm:$0xff] %v1017_v49  ;;  %v1023_v52 = vld [vmem:[%s1534_s26 + $0x60] sm:$0xff]  ;;  %s1932_s20 = scalar_lea.vmem %s1756_s8, %s1251_s17 [#allocation2]   ;;  %s1069_s23 = scalar_lea.vmem %s1859_s12, %s1251_s17  }
 0x222   : >> { %1020 = vst [vmem:[%s1530_s21 + $0x50] sm:$0xff] %v1019_v50  ;;  %1022 = vst [vmem:[%s1530_s21 + $0x58] sm:$0xff] %v1021_v51  ;;  %v1025_v53 = vld [vmem:[%s1534_s26 + $0x68] sm:$0xff]  ;;  %v1027_v55 = vld [vmem:[%s1534_s26 + $0x70] sm:$0xff] }
 0x223   : >> { %1024 = vst [vmem:[%s1530_s21 + $0x60] sm:$0xff] %v1023_v52  ;;  %1026 = vst [vmem:[%s1530_s21 + $0x68] sm:$0xff] %v1025_v53  ;;  %v1029_v56 = vld [vmem:[%s1534_s26 + $0x78] sm:$0xff]  ;;  %v1031_v57 = vld [vmem:[%s1534_s26 + $0x80] sm:$0xff] }
 0x224   : >> { %1028 = vst [vmem:[%s1530_s21 + $0x70] sm:$0xff] %v1027_v55  ;;  %v1033_v58 = vld [vmem:[%s1534_s26 + $0x88] sm:$0xff]  ;;  %1030 = vst [vmem:[%s1530_s21 + $0x78] sm:$0xff] %v1029_v56  ;;  %v1035_v59 = vld [vmem:[%s1534_s26 + $0x90] sm:$0xff] }
 0x225   : >> { %1032 = vst [vmem:[%s1530_s21 + $0x80] sm:$0xff] %v1031_v57  ;;  %1034 = vst [vmem:[%s1530_s21 + $0x88] sm:$0xff] %v1033_v58  ;;  %v1037_v60 = vld [vmem:[%s1534_s26 + $0x98] sm:$0xff]  ;;  %v1039_v61 = vld [vmem:[%s1534_s26 + $0xa0] sm:$0xff] }
 0x226   : >> { %1036 = vst [vmem:[%s1530_s21 + $0x90] sm:$0xff] %v1035_v59  ;;  %1038 = vst [vmem:[%s1530_s21 + $0x98] sm:$0xff] %v1037_v60  ;;  %v1041_v62 = vld [vmem:[%s1534_s26 + $0xa8] sm:$0xff]  ;;  %v1043_v63 = vld [vmem:[%s1534_s26 + $0xb0] sm:$0xff]  ;;  %995 = sbr.rel (!%p992_p12) target bundleno = 540 (0x21c), region = 130 }
 0x227   : >> { %1040 = vst [vmem:[%s1530_s21 + $0xa0] sm:$0xff] %v1039_v61  ;;  %v1045_v0 = vld [vmem:[%s1534_s26 + $0xb8] sm:$0xff]  ;;  %1042 = vst [vmem:[%s1530_s21 + $0xa8] sm:$0xff] %v1041_v62  ;;  %v1047_v1 = vld [vmem:[%s1534_s26 + $0xc0] sm:$0xff] }
 0x228   : >> { %1044 = vst [vmem:[%s1530_s21 + $0xb0] sm:$0xff] %v1043_v63  ;;  %1046 = vst [vmem:[%s1530_s21 + $0xb8] sm:$0xff] %v1045_v0  ;;  %v1049_v2 = vld [vmem:[%s1534_s26 + $0xc8] sm:$0xff]  ;;  %v1051_v3 = vld [vmem:[%s1534_s26 + $0xd0] sm:$0xff] }
 0x229   : >> { %1048 = vst [vmem:[%s1530_s21 + $0xc0] sm:$0xff] %v1047_v1  ;;  %1050 = vst [vmem:[%s1530_s21 + $0xc8] sm:$0xff] %v1049_v2  ;;  %v1053_v4 = vld [vmem:[%s1534_s26 + $0xd8] sm:$0xff]  ;;  %v1055_v5 = vld [vmem:[%s1534_s26 + $0xe0] sm:$0xff] }
 0x22a   : >> { %1052 = vst [vmem:[%s1530_s21 + $0xd0] sm:$0xff] %v1051_v3  ;;  %v1057_v6 = vld [vmem:[%s1534_s26 + $0xe8] sm:$0xff]  ;;  %1054 = vst [vmem:[%s1530_s21 + $0xd8] sm:$0xff] %v1053_v4  ;;  %v1059_v7 = vld [vmem:[%s1534_s26 + $0xf0] sm:$0xff] }
 0x22b   : >> { %1056 = vst [vmem:[%s1530_s21 + $0xe0] sm:$0xff] %v1055_v5  ;;  %1058 = vst [vmem:[%s1530_s21 + $0xe8] sm:$0xff] %v1057_v6  ;;  %v1061_v8 = vld [vmem:[%s1534_s26 + $0xf8] sm:$0xff]  ;;  %s2001_s26 = smov %s1932_s20 }
 0x22c   : >> { %1060 = vst [vmem:[%s1530_s21 + $0xf0] sm:$0xff] %v1059_v7  ;;  %1062 = vst [vmem:[%s1530_s21 + $0xf8] sm:$0xff] %v1061_v8  ;;  %s2000_s21 = smov %s1069_s23 }
 0x22d PF: > { %s1973_s24 = sand.u32 31, %s2007_s18   ;;  %s1262_s27 = sshll.u32 %s1865_s14, 8 }
 0x22e   : > { %s1074_s28 = scalar_lea.vmem %s1756_s8, %s1262_s27 [#allocation2]   ;;  %s1076_s30 = scalar_lea.vmem %s1859_s12, %s1262_s27  }
 0x22f   : > { %p1256_p13 = scmp.le.s32.totalorder %s1973_s24, 0 }
 0x230   : > { %s1544_s6 = smov (!%p1256_p13), %s1076_s30   ;;  %s1548_s7 = smov (!%p1256_p13), %s1074_s28  }
 0x231   : > { %1167 = sbr.rel (%p1256_p13) target bundleno = 578 (0x242), region = 135  ;;  %s1552_s9 = smov (!%p1256_p13), 0  }
 0x232   : > { %s1556_s10 = smov (!%p1256_p13), 0  }
 0x238 LB: >> { %v1086_v9 = vld [vmem:[%s1550_s7] sm:$0xff]  ;;  %s1088_s18 = sadd.s32 1, %s1554_s9  ;;  %s1080_s10 = sadd.s32 1, %s1558_s10   ;;  %s1558_s10 = sphi %s1556_s10, %s1080_s10   ;;  %s1554_s9 = sphi %s1552_s9, %s1553_s9   ;;  %s1550_s7 = sphi %s1548_s7, %s1093_s7   ;;  %s1546_s6 = sphi %s1544_s6, %s1094_s6  }
 0x239   : >> { %1087 = vst [vmem:[%s1546_s6] sm:$0xff] %v1086_v9  ;;  %p1089_p0 = scmp.ge.s32.totalorder %s1088_s18, %s1973_s24  ;;  %p1079_p1 = scmp.ge.s32.totalorder %s1080_s10, %s1973_s24 }
 0x23b   : >> { %s2011_s18 = smov (%p1089_p0, %s1088_s18), 0  ;;  %1082 = sbr.rel (!%p1079_p1) target bundleno = 568 (0x238), region = 141 }
 0x23c   : >> { %s1257_s8 = sshll.u32 %s2011_s18, 3  ;;  %s1553_s9 = smov %s2011_s18  }
 0x23d   : >> { %s1093_s7 = scalar_lea.vmem %s1074_s28, %s1257_s8 [#allocation2]   ;;  %s1094_s6 = scalar_lea.vmem %s1076_s30, %s1257_s8  }
 0x242 PF: > { %p12_p2 = scmp.ge.s32.totalorder %s1605_s22, 4   ;;  %s2003_s18 = smov %s1522_s19 }
 0x243   : > { %s2004_s19 = smov %s1613_s25  ;;  %s2005_s20 = smov %s1605_s22 }
 0x244   :  { %14 = sbr.rel (!%p12_p2) target bundleno = 2 (0x2), region = 152 }

</bundles_post_ra>
